<compile_context>
chip_gen: v6e
topology: v6e:2x2x1
jax: 0.10.0
libtpu: 0.0.40
codegen_flags: <defaults>
</compile_context>

<pallas_src>
from functools import partial

import jax
import jax.numpy as jnp
from jax.experimental import pallas as pl
from jax.experimental.pallas import tpu as pltpu


def _awl_kernel(*refs, num):
    # refs layout: params_ref (num,), loss_ref_0 (1,), ..., loss_ref_{num-1} (1,), out_ref (1,)
    params_ref = refs[0]
    loss_refs = refs[1 : 1 + num]
    out_ref = refs[1 + num]

    p0 = params_ref[0]
    p1 = params_ref[1]
    acc = p0 * p0 * loss_refs[0][0] * 0.5
    for i in range(1, num):  # num is static & tiny -> fully unrolled scalar ops
        p = params_ref[i]
        acc = acc + p * p * loss_refs[i][0] * 0.5
    # Regularizer exactly as in the PyTorch module: 1 / (params[0]**2 * params[1]**2)
    acc = acc + 1.0 / (p0 * p0 * p1 * p1)
    out_ref[0] = acc


@jax.jit
def automatic_weighted_loss(params, *losses):
    """params: (num,) f32 array (num >= 2); losses: num scalar losses (matching the
    PyTorch `forward(self, *x)` signature). Returns a scalar f32 loss_sum."""
    params = jnp.asarray(params, dtype=jnp.float32)
    num = params.shape[0]
    assert num >= 2, "AutomaticWeightedLoss regularizer uses params[0] and params[1]"
    assert len(losses) == num, "number of losses must match number of params"

    # Each loss is a (1,) f32 SMEM input; reshapes are layout-only under jit.
    loss_arrs = tuple(
        jnp.asarray(l, dtype=jnp.float32).reshape((1,)) for l in losses
    )

    smem = pl.BlockSpec(memory_space=pltpu.MemorySpace.SMEM)
    out = pl.pallas_call(
        partial(_awl_kernel, num=num),
        out_shape=jax.ShapeDtypeStruct((1,), jnp.float32),
        in_specs=[smem] * (1 + num),
        out_specs=smem,
        cost_estimate=pl.CostEstimate(
            flops=3 * num + 4,
            transcendentals=0,
            bytes_accessed=4 * (2 * num + 1),
        ),
    )(params, *loss_arrs)
    # Slice to scalar inside the jit (fused; no extra dispatch).
    return out[0]


if __name__ == "__main__":
    num = 2
    # Deterministic parameter init, matching torch.ones(num) in __init__.
    params = jnp.ones((num,), dtype=jnp.float32)

    # Deterministic example "multi-task losses" (scalars), as the forward expects.
    key = jax.random.PRNGKey(0)
    k1, k2 = jax.random.split(key)
    loss1 = jnp.abs(jax.random.normal(k1, (), dtype=jnp.float32)) + 1.0
    loss2 = jnp.abs(jax.random.normal(k2, (), dtype=jnp.float32)) + 2.0

    result = automatic_weighted_loss(params, loss1, loss2)
    result = jax.block_until_ready(result)

    # Reference check (pure JAX, same math as the PyTorch forward).
    ref = (params[0] ** 2 * loss1 / 2
           + params[1] ** 2 * loss2 / 2
           + 1.0 / (params[0] ** 2 * params[1] ** 2))
    assert jnp.allclose(result, ref, rtol=1e-6, atol=1e-6), (result, ref)

    print("KERNEL_OK")
</pallas_src>

<mosaic_0001>
module attributes {stable_mosaic.version = 11 : i64} {
  func.func @_awl_kernel(%arg0: memref<2xf32, #tpu.memory_space<smem>>, %arg1: memref<1xf32, #tpu.memory_space<smem>>, %arg2: memref<1xf32, #tpu.memory_space<smem>>, %arg3: memref<1xf32, #tpu.memory_space<smem>>) attributes {dimension_semantics = [], scalar_prefetch = 0 : i64, scratch_operands = 0 : i64, tpu.core_type = #tpu.core_type<tc>} {
    %c0 = arith.constant 0 : index
    %0 = memref.load %arg0[%c0] : memref<2xf32, #tpu.memory_space<smem>>
    %c1 = arith.constant 1 : index
    %1 = memref.load %arg0[%c1] : memref<2xf32, #tpu.memory_space<smem>>
    %2 = arith.mulf %0, %0 : f32
    %c0_0 = arith.constant 0 : index
    %3 = memref.load %arg1[%c0_0] : memref<1xf32, #tpu.memory_space<smem>>
    %4 = arith.mulf %2, %3 : f32
    %cst = arith.constant 5.000000e-01 : f32
    %5 = arith.mulf %4, %cst : f32
    %c1_1 = arith.constant 1 : index
    %6 = memref.load %arg0[%c1_1] : memref<2xf32, #tpu.memory_space<smem>>
    %7 = arith.mulf %6, %6 : f32
    %c0_2 = arith.constant 0 : index
    %8 = memref.load %arg2[%c0_2] : memref<1xf32, #tpu.memory_space<smem>>
    %9 = arith.mulf %7, %8 : f32
    %cst_3 = arith.constant 5.000000e-01 : f32
    %10 = arith.mulf %9, %cst_3 : f32
    %11 = arith.addf %5, %10 : f32
    %12 = arith.mulf %0, %0 : f32
    %13 = arith.mulf %12, %1 : f32
    %14 = arith.mulf %13, %1 : f32
    %cst_4 = arith.constant 1.000000e+00 : f32
    %15 = arith.divf %cst_4, %14 : f32
    %16 = arith.addf %11, %15 : f32
    %c0_5 = arith.constant 0 : index
    %17 = memref.load %arg3[%c0_5] : memref<1xf32, #tpu.memory_space<smem>>
    memref.store %16, %arg3[%c0_5] : memref<1xf32, #tpu.memory_space<smem>>
    return
  }
}

</mosaic_0001>

<bundles_post_ra>
// kernel: automatic_weighted_loss.1
= control target key start
LH: loop header
LB: loop body
LE: loop exit
PB: predicated region body
PF: predicated region fallthrough
CT: control target
= control target key end

     0   :  { %10 = vsyncpa [#allocation6], 0  ;;  %s128_s0 = inlined_call_operand.vmem [shape: f32[2], index: 0, kind: input, shape index: {}]   ;;  %s129_s1 = inlined_call_operand.<no memory space> [shape: f32[1], index: 1, kind: input, shape index: {}]   ;;  %s130_s2 = inlined_call_operand.<no memory space> [shape: f32[1], index: 2, kind: input, shape index: {}]   ;;  %s131_s3 = inlined_call_operand.hbm [shape: f32[1], index: 3, kind: output, shape index: {}]  }
   0x1   :  { %11 = vsyncpa [#allocation5], 0  ;;  %s18_s14 = sshll.u32 %s128_s0, 4  ;;  %s19_s14 = int_to_ptr.vmem [resolvable:$true] %s18_s14 }
   0x2   :  { %s70_s15 = scalar_lea.vmem %s19_s14, 16  ;;  %p75_p1 = scmp.lt.s32.totalorder %s19_s14, %s19_s14 }
   0x3   :  { %p71_p0 = scmp.ne.s32.totalorder %s19_s14, %s70_s15  ;;  %p76_p2 = scmp.lt.s32.totalorder %s70_s15, %s70_s15 }
   0x5   :  { %p77_p3 = por %p76_p2, %p75_p1 }
   0x7   :  { %p78_p4 = pnand %p77_p3, %p71_p0 }
   0x9   :  { %81 = shalt.err (!%p78_p4)
}
   0xa   :  { %s94_s16 = smov [#allocation4]  }
   0xb   :  { %21 = dma.vmem_to_smem %s19_s14, 16, %s94_s16, [#allocation6]  }
   0xc   :  { %90 = dma.done.wait [#allocation6], 16  }
   0xd   :  { %91 = vsyncadd [#allocation6], 4294967280 }
   0xe   :  { %29 = sfence }
   0xf   :  { %s30_s17 = sld [smem:[#allocation4]]  ;;  %s95_s6 = smov [#allocation7]  }
  0x10   :  { %s63_s18 = sld [smem:[#allocation4 + $0x1]] }
  0x15   :  { %s32_s19 = smul.f32 %s30_s17, %s30_s17 }
  0x16   :  { %s36_s20 = smul.f32 %s63_s18, %s63_s18 }
  0x17   :  { %s41_s21 = smul.f32 %s63_s18, %s32_s19 }
  0x18   :  { %s34_s23 = smul.f32 %s32_s19, %s129_s1 }
  0x19   :  { %s42_s24 = smul.f32 %s63_s18, %s41_s21 }
  0x1a   :  { %s35_s25 = smul.f32 0.5, %s34_s23 }
  0x1b   :  { %v43_v0 = vstv %s42_s24  ;;  %s38_s28 = smul.f32 %s36_s20, %s130_s2 }
  0x1c   :  { %68 = vrcp.f32 %v43_v0 }
  0x1d   :  { %s39_s29 = smul.f32 0.5, %s38_s28 }
  0x1f   :  { %s40_s30 = sadd.f32 %s39_s29, %s35_s25 }
  0x29   :  { %v69_v1 = vpop.eup %68 }
  0x2a   :  { %64 = vpush %v69_v1 }
  0x5b   :  { %s65_s4 = spop %64 }
  0x5c   :  { %s46_s5 = sadd.f32 %s65_s4, %s40_s30 }
  0x5e   :  { %48 = sst [smem:[#allocation7]] %s46_s5 }
  0x5f   :  { %56 = dma.smem_to_hbm %s95_s6, 16, %s131_s3, [#allocation5]  }
  0x60   :  { %92 = dma.done.wait [#allocation5], 16  }
  0x61   :  { %93 = vsyncadd [#allocation5], 4294967280 }
  0x62   :  { %60 = sfence }
  0x63   :  { %61 = vsyncpa [#allocation5], 1 }
  0x64   :  { %62 = vsyncpa [#allocation6], 1 }

</bundles_post_ra>
